<compile_context>
chip_gen: v7x
topology: tpu7x:2x2x1
jax: 0.10.0
libtpu: 0.0.40
codegen_flags: <defaults>
</compile_context>

<pallas_src>
import jax
import jax.numpy as jnp
import numpy as np
from jax.experimental import pallas as pl
from jax.experimental.pallas import tpu as pltpu


# ----------------------------------------------------------------------------
# Pallas kernel: one batch-block (TB rows x L links) per grid step
# ----------------------------------------------------------------------------
def mlptte_kernel(x_ref,        # (TB*L, 35) bf16: [features(32) | ones | mask_all | mask_mid]
                  w1_ref,       # (35, 256) bf16: [W1 ; b1 ; 0 ; 0]
                  w2_ref,       # (256, 17) bf16: [W2_folded | 0]
                  b2_ref,       # (1, 17)  f32 : [b2_folded | 1.0]
                  w3_ref,       # (17, 3)  f32 : [W3 ; b3]
                  out_ref):     # (TB, 8)  f32 : [result(3) | mid_result(3) | pad(2)]
    M, NF = x_ref.shape
    TB = out_ref.shape[0]
    L = M // TB
    C = w2_ref.shape[1]                                         # 17

    x = x_ref[...]                                              # (M, 35) bf16

    # all_mlp: Linear(32->256) with b1 folded into W1 (ones column); ReLU.
    h = jnp.dot(x, w1_ref[...], preferred_element_type=jnp.float32)
    h = jnp.maximum(h, 0.0)                                     # (M, 256) f32

    # LinkReg hidden: Linear(256->16) (+ folded eval BN), ones column folded in.
    z = jnp.dot(h.astype(jnp.bfloat16), w2_ref[...],
                preferred_element_type=jnp.float32) + b2_ref[...]
    z = jnp.maximum(z, 0.0)                                     # (M, 17) f32

    # Length mask (applied before Linear2 in the reference). Bit-exact move to
    # the 17-lane z: a masked (zeroed-h) row would have produced ReLU(b2).
    relu_b2 = jnp.maximum(b2_ref[...], 0.0)                     # (1, 17)
    ma = x[:, NF - 2:NF - 1].astype(jnp.float32)                # (M, 1) 0/1 length mask
    mm = x[:, NF - 1:NF].astype(jnp.float32)                    # (M, 1) 0/1 mid mask
    z = jnp.where(ma > 0.0, z, relu_b2)                         # (M, 17)
    zm = z * mm                                                 # (M, 17)

    # Per-batch-row link sums; the ones column carries b3 (times link / mid
    # counts) through the sum automatically. L == 8 keeps the reshape trivial.
    zs = jnp.sum(z.reshape(TB, L, C), axis=1)                   # (TB, 17)
    zms = jnp.sum(zm.reshape(TB, L, C), axis=1)                 # (TB, 17)

    # Single fused tiny projection for both outputs.
    proj = jnp.dot(jnp.concatenate([zs, zms], axis=0), w3_ref[...],
                   preferred_element_type=jnp.float32)          # (2*TB, 3)
    out_ref[...] = jnp.concatenate(
        [proj[:TB], proj[TB:], jnp.zeros((TB, 2), jnp.float32)], axis=1)


def mlptte_pallas(all_input, all_num, mid_num, params, max_tb=1024):
    """all_input: (B, L, 32) f32, all_num/mid_num: (B,) int32 -> two (B, 3)."""
    B, L, F = all_input.shape

    # Batch block: multiple of 8, capped at max_tb, and small enough that the
    # grid has >= 2 steps when B allows it (v7x megacore parallelism).
    tb_two_steps = max(8, (((B + 1) // 2) + 7) // 8 * 8)
    TB = max(8, (min(max_tb, tb_two_steps) // 8) * 8)
    B_pad = ((B + TB - 1) // TB) * TB
    if B_pad != B:
        pad = B_pad - B
        all_input = jnp.pad(all_input, ((0, pad), (0, 0), (0, 0)))
        all_num = jnp.pad(all_num, (0, pad))
        mid_num = jnp.pad(mid_num, (0, pad))

    # Flatten links and append [ones | mask_all | mask_mid] as bf16 columns so
    # the only per-step streamed HBM input is x itself.
    x_flat = all_input.reshape(B_pad * L, F)
    link_idx = jnp.arange(L, dtype=jnp.int32)[None, :]
    mask_all = (link_idx < all_num[:, None]).astype(jnp.float32).reshape(B_pad * L, 1)
    mask_mid = (link_idx < mid_num[:, None]).astype(jnp.float32).reshape(B_pad * L, 1)
    ones = jnp.ones((B_pad * L, 1), jnp.float32)
    x_aug = jnp.concatenate([x_flat, ones, mask_all, mask_mid],
                            axis=1).astype(jnp.bfloat16)                # (B_pad*L, F+3)

    # Fold b1 into W1 (ones column) and add zero rows for the two mask columns.
    w1_aug = jnp.concatenate(
        [params["w1"], params["b1"],
         jnp.zeros((2, params["w1"].shape[1]), jnp.float32)],
        axis=0).astype(jnp.bfloat16)                                    # (F+3, 256)
    # Fold a ones column into W2/b2 so z is produced 17-wide directly.
    w2_aug = jnp.concatenate(
        [params["w2_folded"],
         jnp.zeros((params["w2_folded"].shape[0], 1), jnp.float32)],
        axis=1).astype(jnp.bfloat16)                                    # (256, 17)
    b2_aug = jnp.concatenate(
        [params["b2_folded"], jnp.ones((1, 1), jnp.float32)], axis=1)   # (1, 17)
    w3_aug = jnp.concatenate([params["w3"], params["b3"]], axis=0)      # (17, 3)

    M = TB * L
    NF = F + 3
    grid = (B_pad // TB,)

    grid_spec = pltpu.PrefetchScalarGridSpec(
        num_scalar_prefetch=0,
        grid=grid,
        in_specs=[
            pl.BlockSpec((M, NF), lambda i: (i, 0)),          # streamed inputs + masks
            pl.BlockSpec(w1_aug.shape, lambda i: (0, 0)),     # resident weights
            pl.BlockSpec(w2_aug.shape, lambda i: (0, 0)),
            pl.BlockSpec(b2_aug.shape, lambda i: (0, 0)),
            pl.BlockSpec(w3_aug.shape, lambda i: (0, 0)),
        ],
        out_specs=pl.BlockSpec((TB, 8), lambda i: (i, 0)),    # lane-packed outputs
    )

    out = pl.pallas_call(
        mlptte_kernel,
        grid_spec=grid_spec,
        out_shape=jax.ShapeDtypeStruct((B_pad, 8), jnp.float32),
        compiler_params=pltpu.CompilerParams(
            dimension_semantics=("parallel",),
            vmem_limit_bytes=64 * 1024 * 1024),
    )(x_aug, w1_aug, w2_aug, b2_aug, w3_aug)

    return out[:B, 0:3], out[:B, 3:6]


# ----------------------------------------------------------------------------
# Parameter construction (deterministic, synthetic) + plain-JAX glue
# ----------------------------------------------------------------------------
EMBED_DIMS = (16, 5, 4, 2, 2)                  # sum = 29 = all_embed_dim
MLP_OUT_DIM = 256
LINKREG_HIDDEN = 16


def init_params(key, feature_ranges):
    keys = jax.random.split(key, 16)
    params = {}

    # Embedding tables, xavier_uniform init.
    emb_tables = []
    for i, (rng, dim) in enumerate(zip(feature_ranges, EMBED_DIMS)):
        n = rng + 1
        bound = float(np.sqrt(6.0 / (n + dim)))
        emb_tables.append(jax.random.uniform(keys[i], (n, dim), jnp.float32,
                                             minval=-bound, maxval=bound))
    params["emb"] = emb_tables

    # all_mlp: Linear(29 + 3 = 32 -> 256)
    params["w1"] = 0.1 * jax.random.normal(keys[5], (32, MLP_OUT_DIM), jnp.float32)
    params["b1"] = 0.1 * jax.random.normal(keys[6], (1, MLP_OUT_DIM), jnp.float32)

    # LinkReg: Linear(256 -> 16), BatchNorm1d(16), ReLU, Dropout, Linear(16 -> 3)
    w2 = 0.1 * jax.random.normal(keys[7], (MLP_OUT_DIM, LINKREG_HIDDEN), jnp.float32)
    b2 = 0.1 * jax.random.normal(keys[8], (LINKREG_HIDDEN,), jnp.float32)
    # Fresh BatchNorm1d buffers/affine params (eval mode), folded into Linear2.
    gamma = jnp.ones((LINKREG_HIDDEN,), jnp.float32)
    beta = jnp.zeros((LINKREG_HIDDEN,), jnp.float32)
    running_mean = jnp.zeros((LINKREG_HIDDEN,), jnp.float32)
    running_var = jnp.ones((LINKREG_HIDDEN,), jnp.float32)
    eps = 1e-5
    scale = gamma / jnp.sqrt(running_var + eps)
    shift = beta - running_mean * scale
    params["w2_folded"] = w2 * scale[None, :]
    params["b2_folded"] = (b2 * scale + shift)[None, :]

    params["w3"] = 0.1 * jax.random.normal(keys[9], (LINKREG_HIDDEN, 3), jnp.float32)
    params["b3"] = 0.1 * jax.random.normal(keys[10], (1, 3), jnp.float32)
    return params


def build_all_input(params, all_link_feature, all_flow, all_linkdistance, all_real):
    """LinkFeatureEmbedding + concat (plain-JAX glue)."""
    embedded = [params["emb"][i][all_link_feature[:, :, i]]
                for i in range(len(EMBED_DIMS))]
    emb = jnp.concatenate(embedded, axis=-1)                 # (B, L, 29)
    return jnp.concatenate([emb, all_real, all_flow, all_linkdistance], axis=2)


def mlptte_forward(params, all_link_feature, all_flow, all_linkdistance,
                   all_real, all_num, mid_num=None):
    all_input = build_all_input(params, all_link_feature, all_flow,
                                all_linkdistance, all_real)
    B = all_input.shape[0]
    mid = mid_num if mid_num is not None else jnp.zeros((B,), jnp.int32)
    result, mid_result = mlptte_pallas(all_input, all_num.astype(jnp.int32),
                                       mid.astype(jnp.int32), params)
    if mid_num is not None:
        return result, mid_result
    return result


# ----------------------------------------------------------------------------
# Pure-JAX reference for verification
# ----------------------------------------------------------------------------
def mlptte_reference(params, all_link_feature, all_flow, all_linkdistance,
                     all_real, all_num, mid_num=None, match_kernel_dtypes=False):
    all_input = build_all_input(params, all_link_feature, all_flow,
                                all_linkdistance, all_real)
    B, L, F = all_input.shape
    x = all_input.reshape(B * L, F)
    w1, b1, w2 = params["w1"], params["b1"], params["w2_folded"]
    if match_kernel_dtypes:
        x = x.astype(jnp.bfloat16)
        w1 = w1.astype(jnp.bfloat16)
        b1 = b1.astype(jnp.bfloat16).astype(jnp.float32)   # b1 rides as a bf16 W1 row
        w2 = w2.astype(jnp.bfloat16)
    h = jax.nn.relu(jnp.dot(x, w1, preferred_element_type=jnp.float32) + b1)
    mask = (jnp.arange(L)[None, :] < all_num[:, None]).astype(jnp.float32)
    h = h * mask.reshape(B * L, 1)
    hh = h.astype(jnp.bfloat16) if match_kernel_dtypes else h
    z = jax.nn.relu(jnp.dot(hh, w2, preferred_element_type=jnp.float32)
                    + params["b2_folded"])
    link_out = (jnp.dot(z, params["w3"], preferred_element_type=jnp.float32)
                + params["b3"]).reshape(B, L, 3)
    result = jnp.sum(link_out, axis=1)
    if mid_num is not None:
        mid_mask = (jnp.arange(L)[None, :] < mid_num[:, None]).astype(jnp.float32)
        return result, jnp.sum(link_out * mid_mask[:, :, None], axis=1)
    return result


# ----------------------------------------------------------------------------
if __name__ == "__main__":
    key = jax.random.PRNGKey(0)
    k_param, k_small, k_big = jax.random.split(key, 3)

    # FLAGS-like feature ranges: [num_components, highway_num, lane_num, reversed, oneway]
    feature_ranges = [10, 6, 5, 1, 1]
    params = init_params(k_param, feature_ranges)

    def make_inputs(k, B, L):
        ks = jax.random.split(k, 6)
        feat = jnp.stack(
            [jax.random.randint(jax.random.fold_in(ks[0], i), (B, L), 0, r + 1)
             for i, r in enumerate(feature_ranges)], axis=-1).astype(jnp.int32)
        flow = jax.random.normal(ks[1], (B, L, 1), jnp.float32)
        dist = jax.random.normal(ks[2], (B, L, 1), jnp.float32)
        real = jax.random.normal(ks[3], (B, L, 1), jnp.float32)
        num = jax.random.randint(ks[4], (B,), 1, L + 1).astype(jnp.int32)
        mid = jax.random.randint(ks[5], (B,), 1, L + 1).astype(jnp.int32)
        return feat, flow, dist, real, num, mid

    # ---- small test (B=2, L=8), default path (mid_num=None) ----
    B, L = 2, 8
    feat, flow, dist, real, num, mid = make_inputs(k_small, B, L)

    out = mlptte_forward(params, feat, flow, dist, real, num)
    out = jax.block_until_ready(out)
    ref_bf = mlptte_reference(params, feat, flow, dist, real, num,
                              match_kernel_dtypes=True)
    ref_f32 = mlptte_reference(params, feat, flow, dist, real, num)
    np.testing.assert_allclose(np.asarray(out), np.asarray(ref_bf),
                               rtol=2e-3, atol=2e-3)
    np.testing.assert_allclose(np.asarray(out), np.asarray(ref_f32),
                               rtol=3e-2, atol=3e-2)

    # ---- small test, mid_num path ----
    out2, mid2 = mlptte_forward(params, feat, flow, dist, real, num, mid)
    jax.block_until_ready((out2, mid2))
    ref2_bf, mid2_bf = mlptte_reference(params, feat, flow, dist, real, num, mid,
                                        match_kernel_dtypes=True)
    np.testing.assert_allclose(np.asarray(out2), np.asarray(ref2_bf),
                               rtol=2e-3, atol=2e-3)
    np.testing.assert_allclose(np.asarray(mid2), np.asarray(mid2_bf),
                               rtol=2e-3, atol=2e-3)

    # ---- larger test (B=160 -> TB=80, 2 parallel grid steps) ----
    Bb = 160
    feat, flow, dist, real, num, mid = make_inputs(k_big, Bb, L)
    out3, mid3 = mlptte_forward(params, feat, flow, dist, real, num, mid)
    jax.block_until_ready((out3, mid3))
    ref3_bf, mid3_bf = mlptte_reference(params, feat, flow, dist, real, num, mid,
                                        match_kernel_dtypes=True)
    np.testing.assert_allclose(np.asarray(out3), np.asarray(ref3_bf),
                               rtol=2e-3, atol=2e-3)
    np.testing.assert_allclose(np.asarray(mid3), np.asarray(mid3_bf),
                               rtol=2e-3, atol=2e-3)

    print("KERNEL_OK")
</pallas_src>

<mosaic_0001>
module attributes {stable_mosaic.version = 11 : i64} {
  func.func @mlptte_kernel(%arg0: i32, %arg1: memref<64x35xbf16, #tpu.memory_space<vmem>>, %arg2: memref<35x256xbf16, #tpu.memory_space<vmem>>, %arg3: memref<256x17xbf16, #tpu.memory_space<vmem>>, %arg4: memref<1x17xf32, #tpu.memory_space<vmem>>, %arg5: memref<17x3xf32, #tpu.memory_space<vmem>>, %arg6: memref<8x8xf32, #tpu.memory_space<vmem>>) attributes {dimension_semantics = [#tpu.dimension_semantics<parallel>], iteration_bounds = array<i64: 1>, scalar_prefetch = 0 : i64, scratch_operands = 0 : i64, tpu.core_type = #tpu.core_type<tc>, window_params = [{transform_indices = @transform_0, window_bounds = array<i64: 64, 35>}, {pipeline_mode = #tpu.pipeline_mode<synchronous>, transform_indices = @transform_1, window_bounds = array<i64: 35, 256>}, {pipeline_mode = #tpu.pipeline_mode<synchronous>, transform_indices = @transform_2, window_bounds = array<i64: 256, 17>}, {pipeline_mode = #tpu.pipeline_mode<synchronous>, transform_indices = @transform_3, window_bounds = array<i64: 1, 17>}, {pipeline_mode = #tpu.pipeline_mode<synchronous>, transform_indices = @transform_4, window_bounds = array<i64: 17, 3>}, {transform_indices = @transform_5, window_bounds = array<i64: 8, 8>}]} {
    %c0 = arith.constant 0 : index
    %c0_0 = arith.constant 0 : index
    %0 = vector.load %arg1[%c0, %c0_0] : memref<64x35xbf16, #tpu.memory_space<vmem>>, vector<64x35xbf16>
    %c0_1 = arith.constant 0 : index
    %c0_2 = arith.constant 0 : index
    %1 = vector.load %arg2[%c0_1, %c0_2] : memref<35x256xbf16, #tpu.memory_space<vmem>>, vector<35x256xbf16>
    %cst = arith.constant dense<0.000000e+00> : vector<64x256xf32>
    %2 = tpu.matmul %0, %1, %cst {dimension_numbers = #tpu.dot_dimension_numbers<[1], [0], [0], [1], [0, 0, 1, 1], [], []>} : vector<64x35xbf16>, vector<35x256xbf16>, vector<64x256xf32> -> vector<64x256xf32>
    %cst_3 = arith.constant 0.000000e+00 : f32
    %3 = vector.broadcast %cst_3 : f32 to vector<64x256xf32>
    %4 = arith.maximumf %2, %3 : vector<64x256xf32>
    %5 = arith.truncf %4 : vector<64x256xf32> to vector<64x256xbf16>
    %c0_4 = arith.constant 0 : index
    %c0_5 = arith.constant 0 : index
    %6 = vector.load %arg3[%c0_4, %c0_5] : memref<256x17xbf16, #tpu.memory_space<vmem>>, vector<256x17xbf16>
    %cst_6 = arith.constant dense<0.000000e+00> : vector<64x17xf32>
    %7 = tpu.matmul %5, %6, %cst_6 {dimension_numbers = #tpu.dot_dimension_numbers<[1], [0], [0], [1], [0, 0, 1, 1], [], []>} : vector<64x256xbf16>, vector<256x17xbf16>, vector<64x17xf32> -> vector<64x17xf32>
    %c0_7 = arith.constant 0 : index
    %c0_8 = arith.constant 0 : index
    %8 = vector.load %arg4[%c0_7, %c0_8] : memref<1x17xf32, #tpu.memory_space<vmem>>, vector<1x17xf32>
    %9 = vector.broadcast %8 : vector<1x17xf32> to vector<64x17xf32>
    %10 = arith.addf %7, %9 : vector<64x17xf32>
    %cst_9 = arith.constant 0.000000e+00 : f32
    %11 = vector.broadcast %cst_9 : f32 to vector<64x17xf32>
    %12 = arith.maximumf %10, %11 : vector<64x17xf32>
    %c0_10 = arith.constant 0 : index
    %c0_11 = arith.constant 0 : index
    %13 = vector.load %arg4[%c0_10, %c0_11] : memref<1x17xf32, #tpu.memory_space<vmem>>, vector<1x17xf32>
    %cst_12 = arith.constant 0.000000e+00 : f32
    %14 = vector.broadcast %cst_12 : f32 to vector<1x17xf32>
    %15 = arith.maximumf %13, %14 : vector<1x17xf32>
    %16 = vector.extract_strided_slice %0 {offsets = [0, 33], sizes = [64, 1], strides = [1, 1]} : vector<64x35xbf16> to vector<64x1xbf16>
    %17 = arith.extf %16 : vector<64x1xbf16> to vector<64x1xf32>
    %18 = vector.extract_strided_slice %0 {offsets = [0, 34], sizes = [64, 1], strides = [1, 1]} : vector<64x35xbf16> to vector<64x1xbf16>
    %19 = arith.extf %18 : vector<64x1xbf16> to vector<64x1xf32>
    %cst_13 = arith.constant 0.000000e+00 : f32
    %20 = vector.broadcast %cst_13 : f32 to vector<64x1xf32>
    %21 = arith.cmpf ogt, %17, %20 : vector<64x1xf32>
    %22 = vector.shape_cast %21 : vector<64x1xi1> to vector<64x1xi1>
    %23 = vector.broadcast %22 : vector<64x1xi1> to vector<64x17xi1>
    %24 = vector.shape_cast %15 : vector<1x17xf32> to vector<1x17xf32>
    %25 = vector.broadcast %24 : vector<1x17xf32> to vector<64x17xf32>
    %26 = arith.select %23, %12, %25 : vector<64x17xi1>, vector<64x17xf32>
    %27 = vector.broadcast %19 : vector<64x1xf32> to vector<64x17xf32>
    %28 = arith.mulf %26, %27 : vector<64x17xf32>
    %29 = vector.shape_cast %26 : vector<64x17xf32> to vector<8x8x17xf32>
    %cst_14 = arith.constant dense<0.000000e+00> : vector<8x17xf32>
    %30 = vector.multi_reduction <add>, %29, %cst_14 [1] : vector<8x8x17xf32> to vector<8x17xf32>
    %31 = vector.shape_cast %28 : vector<64x17xf32> to vector<8x8x17xf32>
    %cst_15 = arith.constant dense<0.000000e+00> : vector<8x17xf32>
    %32 = vector.multi_reduction <add>, %31, %cst_15 [1] : vector<8x8x17xf32> to vector<8x17xf32>
    %33 = tpu.concatenate %30, %32 in 0 : vector<8x17xf32>, vector<8x17xf32> -> vector<16x17xf32>
    %c0_16 = arith.constant 0 : index
    %c0_17 = arith.constant 0 : index
    %34 = vector.load %arg5[%c0_16, %c0_17] : memref<17x3xf32, #tpu.memory_space<vmem>>, vector<17x3xf32>
    %cst_18 = arith.constant dense<0.000000e+00> : vector<16x3xf32>
    %35 = tpu.matmul %33, %34, %cst_18 {dimension_numbers = #tpu.dot_dimension_numbers<[1], [0], [0], [1], [0, 0, 1, 1], [], []>} : vector<16x17xf32>, vector<17x3xf32>, vector<16x3xf32> -> vector<16x3xf32>
    %36 = vector.extract_strided_slice %35 {offsets = [0, 0], sizes = [8, 3], strides = [1, 1]} : vector<16x3xf32> to vector<8x3xf32>
    %37 = vector.extract_strided_slice %35 {offsets = [8, 0], sizes = [8, 3], strides = [1, 1]} : vector<16x3xf32> to vector<8x3xf32>
    %cst_19 = arith.constant 0.000000e+00 : f32
    %38 = vector.broadcast %cst_19 : f32 to vector<8x2xf32>
    %39 = tpu.concatenate %36, %37, %38 in 1 : vector<8x3xf32>, vector<8x3xf32>, vector<8x2xf32> -> vector<8x8xf32>
    %c0_20 = arith.constant 0 : index
    %c0_21 = arith.constant 0 : index
    %40 = vector.load %arg6[%c0_20, %c0_21] : memref<8x8xf32, #tpu.memory_space<vmem>>, vector<8x8xf32>
    tpu.vector_store %arg6[%c0_20, %c0_21], %39 {strides = array<i32>} : memref<8x8xf32, #tpu.memory_space<vmem>>, vector<8x8xf32>,
    return
  }
  func.func @transform_0(%arg0: i32) -> (i32, i32) {
    %c0_i32 = arith.constant 0 : i32
    %c0_i32_0 = arith.constant 0 : i32
    return %arg0, %c0_i32 : i32, i32
  }
  func.func @transform_1(%arg0: i32) -> (i32, i32) {
    %c0_i32 = arith.constant 0 : i32
    %c0_i32_0 = arith.constant 0 : i32
    %c0_i32_1 = arith.constant 0 : i32
    return %c0_i32, %c0_i32_0 : i32, i32
  }
  func.func @transform_2(%arg0: i32) -> (i32, i32) {
    %c0_i32 = arith.constant 0 : i32
    %c0_i32_0 = arith.constant 0 : i32
    %c0_i32_1 = arith.constant 0 : i32
    return %c0_i32, %c0_i32_0 : i32, i32
  }
  func.func @transform_3(%arg0: i32) -> (i32, i32) {
    %c0_i32 = arith.constant 0 : i32
    %c0_i32_0 = arith.constant 0 : i32
    %c0_i32_1 = arith.constant 0 : i32
    return %c0_i32, %c0_i32_0 : i32, i32
  }
  func.func @transform_4(%arg0: i32) -> (i32, i32) {
    %c0_i32 = arith.constant 0 : i32
    %c0_i32_0 = arith.constant 0 : i32
    %c0_i32_1 = arith.constant 0 : i32
    return %c0_i32, %c0_i32_0 : i32, i32
  }
  func.func @transform_5(%arg0: i32) -> (i32, i32) {
    %c0_i32 = arith.constant 0 : i32
    %c0_i32_0 = arith.constant 0 : i32
    return %arg0, %c0_i32 : i32, i32
  }
}

</mosaic_0001>

<bundles_post_ra>
// kernel: tpu_custom_call.1
= control target key start
LH: loop header
LB: loop body
LE: loop exit
PB: predicated region body
PF: predicated region fallthrough
CT: control target
= control target key end

     0   :  { %10 = vsyncpa [#allocation3], 0  ;;  %s1422_s0 = inlined_call_operand.hbm [shape: bf16[64,35], index: 0, kind: input, shape index: {}]   ;;  %s1423_s1 = inlined_call_operand.hbm [shape: bf16[35,256], index: 1, kind: input, shape index: {}]   ;;  %s1424_s2 = inlined_call_operand.hbm [shape: bf16[256,17], index: 2, kind: input, shape index: {}]   ;;  %s1425_s3 = inlined_call_operand.hbm [shape: f32[1,17], index: 3, kind: input, shape index: {}]   ;;  %s1426_s4 = inlined_call_operand.hbm [shape: f32[17,3], index: 4, kind: input, shape index: {}]   ;;  %s1427_s5 = inlined_call_operand.hbm [shape: f32[8,8], index: 5, kind: output, shape index: {}]  }
   0x1   :  { %11 = vsyncpa [#allocation6], 0 }
   0x2   :  { %12 = vsyncpa [#allocation9], 0 }
   0x3   :  { %13 = vsyncpa [#allocation4], 0  ;;  %s1175_s18 = smov [#allocation5]   ;;  %s1035_s22 = scalar_lea.hbm %s1423_s1, 640 }
   0x4   :  { %s31_s19 = sshll.u32 %s1175_s18, 4  ;;  %p1036_p0 = scmp.ne.s32.totalorder %s1423_s1, %s1035_s22  ;;  %s32_s19 = int_to_ptr.vmem [resolvable:$true] %s31_s19 }
   0x5   :  { %p1039_p1 = scmp.lt.u32.totalorder %s1035_s22, %s1423_s1 }
   0x7   :  { %p1041_p2 = pnand %p1039_p1, %p1036_p0 }
   0x9   :  { %1044 = shalt.err (!%p1041_p2)
}
   0xa   :  { %s1045_s27 = scalar_lea.vmem %s32_s19, 640  ;;  %p1050_p4 = scmp.lt.s32.totalorder %s32_s19, %s32_s19 }
   0xb   :  { %p1046_p3 = scmp.ne.s32.totalorder %s32_s19, %s1045_s27  ;;  %p1051_p5 = scmp.lt.s32.totalorder %s1045_s27, %s1045_s27 }
   0xd   :  { %p1052_p6 = por %p1051_p5, %p1050_p4 }
   0xf   :  { %p1053_p7 = pnand %p1052_p6, %p1046_p3 }
  0x11   :  { %1056 = shalt.err (!%p1053_p7)
}
  0x12   :  { %s1176_s28 = smov 128   ;;  %s1177_s29 = smov 8  }
  0x13   :  { %37 = dma.hbm_to_vmem [thread:$0]  %s1423_s1, 640, %s32_s19, [#allocation6], %s1176_s28, %s1176_s28, %s1177_s29  }
  0x14   :  { %s1178_s7 = smov [#allocation8]   ;;  %s1179_s9 = smov [#allocation2]  }
  0x15   :  { %s56_s8 = sshll.u32 %s1178_s7, 4  ;;  %s19_s10 = sshll.u32 %s1179_s9, 4  ;;  %s57_s8 = int_to_ptr.vmem [resolvable:$true] %s56_s8  ;;  %s20_s10 = int_to_ptr.vmem [resolvable:$true] %s19_s10 }
  0x16   :  { %s1057_s13 = scalar_lea.hbm %s1425_s3, 16 }
  0x17   :  { %p1058_p8 = scmp.ne.s32.totalorder %s1425_s3, %s1057_s13  ;;  %p1061_p9 = scmp.lt.u32.totalorder %s1057_s13, %s1425_s3 }
  0x19   :  { %p1063_p10 = pnand %p1061_p9, %p1058_p8 }
  0x1b   :  { %1066 = shalt.err (!%p1063_p10)
}
  0x1c   :  { %s1067_s1 = scalar_lea.vmem %s57_s8, 16  ;;  %s1071_s18 = scalar_lea.vmem %s57_s8, 32 }
  0x1d   :  { %p1068_p11 = scmp.ne.s32.totalorder %s57_s8, %s1067_s1  ;;  %p1072_p12 = scmp.lt.s32.totalorder %s57_s8, %s57_s8 }
  0x1e   :  { %p1073_p13 = scmp.lt.s32.totalorder %s1071_s18, %s1067_s1 }
  0x20   :  { %p1074_p0 = por %p1073_p13, %p1072_p12 }
  0x22   :  { %p1075_p1 = pnand %p1074_p0, %p1068_p11 }
  0x24   :  { %1078 = shalt.err (!%p1075_p1)
}
  0x25   :  { %59 = dma.hbm_to_vmem [thread:$0]  %s1425_s3, 16, %s57_s8, [#allocation9]  }
  0x26   :  { %s1079_s23 = scalar_lea.hbm %s1422_s0, 512 }
  0x27   :  { %p1080_p2 = scmp.ne.s32.totalorder %s1422_s0, %s1079_s23  ;;  %p1083_p3 = scmp.lt.u32.totalorder %s1079_s23, %s1422_s0 }
  0x29   :  { %p1085_p4 = pnand %p1083_p3, %p1080_p2 }
  0x2b   :  { %1088 = shalt.err (!%p1085_p4)
}
  0x2c   :  { %s1089_s30 = scalar_lea.vmem %s20_s10, 512  ;;  %p1094_p6 = scmp.lt.s32.totalorder %s20_s10, %s20_s10 }
  0x2d   :  { %p1090_p5 = scmp.ne.s32.totalorder %s20_s10, %s1089_s30  ;;  %p1095_p7 = scmp.lt.s32.totalorder %s1089_s30, %s1089_s30 }
  0x2f   :  { %p1096_p8 = por %p1095_p7, %p1094_p6 }
  0x31   :  { %p1097_p9 = pnand %p1096_p8, %p1090_p5 }
  0x33   :  { %1100 = shalt.err (!%p1097_p9)
}
  0x34   :  { %s1180_s3 = smov 64   ;;  %s1181_s6 = smov 4  }
  0x35   :  { %25 = dma.hbm_to_vmem [thread:$0]  %s1422_s0, 512, %s20_s10, [#allocation3], %s1180_s3, %s1180_s3, %s1181_s6  }
  0x36   :  { %s1182_s9 = smov [#allocation7]   ;;  %s1183_s12 = smov [#allocation10]  }
  0x37   :  { %s43_s11 = sshll.u32 %s1182_s9, 4  ;;  %s65_s13 = sshll.u32 %s1183_s12, 4  ;;  %s44_s11 = int_to_ptr.vmem [resolvable:$true] %s43_s11  ;;  %s66_s13 = int_to_ptr.vmem [resolvable:$true] %s65_s13 }
  0x38   :  { %s1101_s16 = scalar_lea.hbm %s1424_s2, 2048 }
  0x39   :  { %p1102_p10 = scmp.ne.s32.totalorder %s1424_s2, %s1101_s16  ;;  %p1105_p11 = scmp.lt.u32.totalorder %s1101_s16, %s1424_s2 }
  0x3b   :  { %p1107_p12 = pnand %p1105_p11, %p1102_p10 }
  0x3d   :  { %1110 = shalt.err (!%p1107_p12)
}
  0x3e   :  { %s1111_s0 = scalar_lea.vmem %s44_s11, 2048  ;;  %p1116_p0 = scmp.lt.s32.totalorder %s44_s11, %s44_s11 }
  0x3f   :  { %p1112_p13 = scmp.ne.s32.totalorder %s44_s11, %s1111_s0  ;;  %p1117_p1 = scmp.lt.s32.totalorder %s1111_s0, %s1111_s0 }
  0x41   :  { %p1118_p2 = por %p1117_p1, %p1116_p0 }
  0x43   :  { %p1119_p3 = pnand %p1118_p2, %p1112_p13 }
  0x45   :  { %1122 = shalt.err (!%p1119_p3)
}
  0x46   :  { %49 = dma.hbm_to_vmem [thread:$0]  %s1424_s2, 2048, %s44_s11, [#allocation6], %s1180_s3, %s1180_s3, %s1181_s6  }
  0x47   :  { %s1123_s23 = scalar_lea.hbm %s1426_s4, 384 }
  0x48   :  { %p1124_p4 = scmp.ne.s32.totalorder %s1426_s4, %s1123_s23  ;;  %p1127_p5 = scmp.lt.u32.totalorder %s1123_s23, %s1426_s4 }
  0x4a   :  { %p1129_p6 = pnand %p1127_p5, %p1124_p4 }
  0x4c   :  { %1132 = shalt.err (!%p1129_p6)
}
  0x4d   :  { %s1133_s30 = scalar_lea.vmem %s66_s13, 384  ;;  %p1138_p8 = scmp.lt.s32.totalorder %s66_s13, %s66_s13 }
  0x4e   :  { %p1134_p7 = scmp.ne.s32.totalorder %s66_s13, %s1133_s30  ;;  %p1139_p9 = scmp.lt.s32.totalorder %s1133_s30, %s1133_s30 }
  0x50   :  { %p1140_p10 = por %p1139_p9, %p1138_p8 }
  0x52   :  { %p1141_p11 = pnand %p1140_p10, %p1134_p7 }
  0x54   :  { %1144 = shalt.err (!%p1141_p11)
}
  0x55   :  { %71 = dma.hbm_to_vmem [thread:$0]  %s1426_s4, 384, %s66_s13, [#allocation9], %s1176_s28, %s1176_s28, %s1177_s29  }
  0x56   :  { %1167 = dma.done.wait [#allocation3], 512  }
  0x57   :  { %1168 = vsyncadd [#allocation3], 4294966784 }
  0x58   :  { %1169 = dma.done.wait [#allocation6], 2688  }
  0x59   :  { %1170 = vsyncadd [#allocation6], 4294964608 }
  0x5a   :  { %1171 = dma.done.wait [#allocation9], 400  }
  0x5b   :  { %1172 = vsyncadd [#allocation9], 4294966896  ;;  %v1184_v0 = vmov 0   ;;  %vm159_vm0 = vcmask 1040384   ;;  %vm160_vm1 = vcmask 1041408   ;;  %v1185_v1 = vmov 65535  }
  0x5c   :  { %201 = vmatprep.mubr.bf16.mxu0 %v1184_v0  ;;  %v161_v2 = vsel %vm159_vm0, 4294967295, %v1185_v1  ;;  %v1003_v3 = vld [vmem:[#allocation5 + $0x4] ss:$8 sps:$4 sm:$0xff]   ;;  %v1005_v4 = vld [vmem:[#allocation5] ss:$8 sps:$4 sm:$0xff]   ;;  %v1017_v16 = vld [vmem:[#allocation7 + $0x48] sm:$0xff]  }
  0x5d   :  { %169 = vmatprep.subr.bf16.mxu0 %v1003_v3  ;;  %v1006_v5 = vld [vmem:[#allocation5 + $0x14] ss:$8 sps:$4 sm:$0xff]   ;;  %v100_v6 = vld [vmem:[#allocation5 + $0x20] sm:$0x33]  ;;  %v162_v7 = vsel %vm160_vm1, %v161_v2, 0  ;;  %v1015_v13 = vld [vmem:[#allocation7 + $0x40] sm:$0xff]  }
  0x5e   :  { %170 = vmatpush1.bf16.msra.mxu0 %v1005_v4  ;;  %v1008_v8 = vld [vmem:[#allocation5 + $0x10] ss:$8 sps:$4 sm:$0xff]   ;;  %v864_v9 = vcombine.high %v100_v6, %v100_v6  ;;  %v863_v10 = vcombine.low %v100_v6, %v100_v6  ;;  %v1288_v12 = vld [vmem:[#allocation2] sm:$0xff]   ;;  %v1016_v14 = vld [vmem:[#allocation7] sm:$0xff]   ;;  %946 = vmatprep.subr.bf16.mxu1 %v1015_v13  ;;  %vm146_vm2 = vcmask 285696   ;;  %v1186_v35 = vmov 34  }
  0x5f   :  { %171 = vmatprep.subr.bf16.mxu0 %v1006_v5  ;;  %954 = vmatpush3.bf16.msra.mxu1 %v1016_v14  ;;  %v1018_v17 = vld [vmem:[#allocation7 + $0x8] sm:$0xff]   ;;  %v1019_v18 = vld [vmem:[#allocation7 + $0x50] sm:$0xff]   ;;  %v90_v19 = vld [vmem:[#allocation2 + $0x8] sm:$0xff]   ;;  %v475_v36 = vunpack.c.l.bf16 %v1288_v12  ;;  %v476_v37 = vunpack.c.h.bf16 %v1288_v12  ;;  %v1187_v43 = vmov 33   ;;  %vm593_vm12 = vcmask 138240   ;;  %s1188_s4 = smov 3  }
  0x60   :  { %v167_v11 = vand.u32 %v864_v9, %v162_v7  ;;  %v164_v15 = vand.u32 %v863_v10, %v162_v7  ;;  %947 = vmatprep.subr.bf16.mxu1 %v1017_v16  ;;  %v1020_v20 = vld [vmem:[#allocation7 + $0x10] sm:$0xff]   ;;  %v1021_v21 = vld [vmem:[#allocation7 + $0x58] sm:$0xff]   ;;  %v1023_v23 = vld [vmem:[#allocation7 + $0x60] sm:$0xff]   ;;  %v477_v33 = vunpack.c.l.bf16 %v90_v19  ;;  %v478_v34 = vunpack.c.h.bf16 %v90_v19  ;;  %983 = vset.pattern.permute.xlu1 %v1186_v35  ;;  %s1189_s28 = smov [#allocation11]  }
  0x61   :  { %v1022_v22 = vld [vmem:[#allocation7 + $0x18] sm:$0xff]   ;;  %v1024_v24 = vld [vmem:[#allocation7 + $0x20] sm:$0xff]   ;;  %v1295_v25 = vld [vmem:[#allocation2 + $0x10] sm:$0xff]   ;;  %977 = vset.pattern.permute.xlu0 %v1186_v35  ;;  %v978_v39 = vpack.i.bf16 %v476_v37, %v475_v36  ;;  %vm483_vm4 = vcmp.gt.f32.partialorder %v475_v36, 0.0  ;;  %vm484_vm6 = vcmp.gt.f32.partialorder %v476_v37, 0.0  ;;  %v300_v37 = vlaneseq  ;;  %s844_s29 = sshll.u32 %s1189_s28, 4  ;;  %s845_s29 = int_to_ptr.vmem [resolvable:$true] %s844_s29 }
  0x62   :  { %172 = vmatpush1.bf16.msra.mxu0 %v1008_v8  ;;  %v1025_v26 = vld [vmem:[#allocation7 + $0x68] sm:$0xff]   ;;  %v1300_v28 = vld [vmem:[#allocation2 + $0x18] sm:$0xff]   ;;  %v1029_v31 = vld [vmem:[#allocation7 + $0x78] sm:$0xff]   ;;  %v984_v38 = vpack.i.bf16 %v478_v34, %v477_v33  ;;  %vm485_vm3 = vcmp.gt.f32.partialorder %v477_v33, 0.0  ;;  %vm486_vm5 = vcmp.gt.f32.partialorder %v478_v34, 0.0  ;;  %v491_v41 = vsel %vm483_vm4, 1, %v1184_v0  ;;  %p1150_p13 = scmp.lt.s32.totalorder %s845_s29, %s845_s29 }
  0x63   :  { %173 = vmatprep.subr.bf16.mxu0 %v167_v11  ;;  %955 = vmatpush3.bf16.msra.mxu1 %v1018_v17  ;;  %v1026_v27 = vld [vmem:[#allocation7 + $0x28] sm:$0xff]   ;;  %v1027_v29 = vld [vmem:[#allocation7 + $0x70] sm:$0xff]   ;;  %v1030_v32 = vld [vmem:[#allocation7 + $0x38] sm:$0xff]   ;;  %v493_v40 = vsel %vm485_vm3, 1, %v1184_v0  ;;  %v479_v42 = vunpack.c.l.bf16 %v1295_v25  ;;  %v480_v44 = vunpack.c.h.bf16 %v1295_v25  ;;  %v494_v45 = vsel %vm486_vm5, 1, %v1184_v0  ;;  %s1145_s6 = scalar_lea.vmem %s845_s29, 128 }
  0x64   :  { %948 = vmatprep.subr.bf16.mxu1 %v1019_v18  ;;  %v1028_v30 = vld [vmem:[#allocation7 + $0x30] sm:$0xff]   ;;  %985 = vperm.xlu1 %983, %v984_v38   ;;  %v492_v46 = vsel %vm484_vm6, 1, %v1184_v0  ;;  %v481_v47 = vunpack.c.l.bf16 %v1300_v28  ;;  %v482_v48 = vunpack.c.h.bf16 %v1300_v28  ;;  %vm716_vm3 = vcmask 1042434   ;;  %p1146_p12 = scmp.ne.s32.totalorder %s845_s29, %s1145_s6  ;;  %p1151_p0 = scmp.lt.s32.totalorder %s1145_s6, %s1145_s6 }
  0x65   :  { %979 = vperm.xlu0 %977, %v978_v39   ;;  %vm487_vm7 = vcmp.gt.f32.partialorder %v479_v42, 0.0  ;;  %vm488_vm8 = vcmp.gt.f32.partialorder %v480_v44, 0.0  ;;  %v992_v53 = vpack.i.bf16 %v480_v44, %v479_v42  ;;  %v745_v34 = vld [vmem:[#allocation10 + $0x10] sm:$0x1]  ;;  %v301_v39 = vshrl.u32 %v300_v37, 7 }
  0x66   :  { %174 = vmatpush1.bf16.msra.mxu0 %v164_v15  ;;  %v495_v49 = vsel %vm487_vm7, 1, %v1184_v0  ;;  %vm489_vm9 = vcmp.gt.f32.partialorder %v481_v47, 0.0  ;;  %v496_v50 = vsel %vm488_vm8, 1, %v1184_v0  ;;  %vm490_vm10 = vcmp.gt.f32.partialorder %v482_v48, 0.0  ;;  %v298_v42 = vld [vmem:[#allocation8] sm:$0x1]  ;;  %p1152_p1 = por %p1151_p0, %p1150_p13 }
  0x67   :  { %888 = vmatprep.subr.bf16.mxu0 %v1015_v13  ;;  %956 = vmatpush3.bf16.msra.mxu1 %v1020_v20  ;;  %v497_v51 = vsel %vm489_vm9, 1, %v1184_v0  ;;  %v498_v52 = vsel %vm490_vm10, 1, %v1184_v0  ;;  %v997_v54 = vpack.i.bf16 %v482_v48, %v481_v47  ;;  %v474_v47 = vmax.f32 %v298_v42, 0.0 }
  0x68   :  { %949 = vmatprep.subr.bf16.mxu1 %v1021_v21  ;;  %990 = vset.pattern.permute.xlu1 %v1187_v43  ;;  %vm718_vm5 = vcmask 1043459   ;;  %vm720_vm7 = vcmask 1044484   ;;  %vm722_vm8 = vcmask 1045509   ;;  %vm724_vm9 = vcmask 1046534   ;;  %p1153_p2 = pnand %p1152_p1, %p1146_p12 }
  0x69   :  { %865 = vmatmul.mubr.msk.bf16.vlgmr.msra.gmra.mrb[0].mxu0 %vm146_vm2, %v1288_v12  ;;  %506 = vperm.xlu1 %990, %v493_v40   ;;  %vm726_vm10 = vcmask 1047559  }
  0x6a   :  { %211 = vmatprep.mubr.bf16.mxu0 %v1184_v0  ;;  %889 = vmatpush3.bf16.msra.mxu0 %v1016_v14 }
  0x6b   :  { %890 = vmatprep.subr.bf16.mxu0 %v1017_v16  ;;  %957 = vmatpush3.bf16.msra.mxu1 %v1022_v22 }
  0x6c   :  { %950 = vmatprep.subr.bf16.mxu1 %v1023_v23  ;;  %989 = vset.pattern.permute.xlu0 %v1187_v43 }
  0x6d   :  { %500 = vperm.xlu0 %989, %v491_v41   ;;  %509 = vperm.xlu1 %990, %v494_v45   ;;  %v302_v41 = vsub.s32 0, %v301_v39 }
  0x6e   :  { %891 = vmatpush3.bf16.msra.mxu0 %v1018_v17 }
  0x6f   :  { %892 = vmatprep.subr.bf16.mxu0 %v1019_v18  ;;  %958 = vmatpush3.bf16.msra.mxu1 %v1024_v24 }
  0x70   :  { %951 = vmatprep.subr.bf16.mxu1 %v1025_v26 }
  0x71   :  { %866 = vmatmul.mubr.msk.bf16.gmra.mrb[4].mxu0 %vm146_vm2, %v90_v19  ;;  %503 = vperm.xlu0 %989, %v492_v46   ;;  %v1328_v46 = vrot.slane %v298_v42, %v302_v41 }
  0x72   :  { %221 = vmatprep.mubr.bf16.mxu0 %v1184_v0  ;;  %893 = vmatpush3.bf16.msra.mxu0 %v1020_v20 }
  0x73   :  { %894 = vmatprep.subr.bf16.mxu0 %v1021_v21  ;;  %959 = vmatpush3.bf16.msra.mxu1 %v1026_v27 }
  0x74   :  { %952 = vmatprep.subr.bf16.mxu1 %v1027_v29  ;;  %512 = vperm.xlu1 %990, %v495_v49  }
  0x75   :  { %515 = vperm.xlu0 %989, %v496_v50  }
  0x76   :  { %895 = vmatpush3.bf16.msra.mxu0 %v1022_v22 }
  0x77   :  { %896 = vmatprep.subr.bf16.mxu0 %v1023_v23  ;;  %960 = vmatpush3.bf16.msra.mxu1 %v1028_v30 }
  0x78   :  { %953 = vmatprep.subr.bf16.mxu1 %v1029_v31  ;;  %518 = vperm.xlu1 %990, %v497_v51  }
  0x79   :  { %867 = vmatmul.mubr.msk.bf16.gmra.mrb[8].mxu0 %vm146_vm2, %v1295_v25  ;;  %521 = vperm.xlu0 %989, %v498_v52  }
  0x7a   :  { %231 = vmatprep.mubr.bf16.mxu0 %v1184_v0  ;;  %897 = vmatpush3.bf16.msra.mxu0 %v1024_v24 }
  0x7b   :  { %898 = vmatprep.subr.bf16.mxu0 %v1025_v26  ;;  %961 = vmatpush3.bf16.msra.mxu1 %v1030_v32 }
  0x7c   :  { %991 = vset.pattern.permute.xlu1 %v1186_v35 }
  0x7d   :  { %993 = vperm.xlu1 %991, %v992_v53   ;;  %1002 = vset.pattern.permute.xlu0 %v1186_v35 }
  0x7e   :  { %899 = vmatpush3.bf16.msra.mxu0 %v1026_v27 }
  0x7f   :  { %900 = vmatprep.subr.bf16.mxu0 %v1027_v29 }
  0x81   :  { %868 = vmatmul.mubr.msk.bf16.gmra.mrb[12].mxu0 %vm146_vm2, %v1300_v28  ;;  %998 = vperm.xlu1 %991, %v997_v54   ;;  %v1331_v54 = vrot.slane %v474_v47, %v302_v41 }
  0x82   :  { %901 = vmatpush3.bf16.msra.mxu0 %v1028_v30 }
  0x83   :  { %902 = vmatprep.subr.bf16.mxu0 %v1029_v31  ;;  %v743_v31 = vld [vmem:[#allocation10] sm:$0xff] }
  0x86   :  { %903 = vmatpush3.bf16.msra.mxu0 %v1030_v32  ;;  %v744_v32 = vld [vmem:[#allocation10 + $0x8] sm:$0xff] }
  0x87   :  { %v942_v33 = vpack.c.bf16 %v744_v32, %v743_v31 }
  0x89   :  { %943 = vmatprep.subr.bf16.mxu0 %v942_v33 }
  0xe3   :  { %v1320_v35 = vpop.permute.xlu1 %985 }
  0xe4   :  { %v980_v38 = vpop.permute.xlu0 %979 }
  0xe8   :  { %v1322_v36 = vpop.permute.xlu1 %506 }
  0xe9   :  { %vm525_vm14 = vcmp.eq.s32.totalorder %v1322_v36, 1 }
  0xec   :  { %v1324_v40 = vpop.permute.xlu1 %509  ;;  %v501_v43 = vpop.permute.xlu0 %500 }
  0xed   :  { %vm523_vm11 = vcmp.eq.s32.totalorder %v501_v43, 1  ;;  %vm526_vm15 = vcmp.eq.s32.totalorder %v1324_v40, 1 }
  0xf3   :  { %v1326_v44 = vpop.permute.xlu1 %512 }
  0xf4   :  { %vm527_vm1 = vcmp.eq.s32.totalorder %v1326_v44, 1 }
 0x13c   :  { %v203_v55 = vpop.f32.mrb[0].mxu0 }
 0x13d   :  { %v205_v56 = vpop.f32.mrb[1].mxu0  ;;  %v242_v58 = vmax.f32 %v203_v55, 0.0  ;;  %v504_v55 = vpop.permute.xlu0 %503 }
 0x13e   :  { %v207_v57 = vpop.f32.mrb[2].mxu0  ;;  %v243_v61 = vmax.f32 %v205_v56, 0.0  ;;  %v1333_v56 = vpop.permute.xlu1 %518  ;;  %vm524_vm13 = vcmp.eq.s32.totalorder %v504_v55, 1 }
 0x13f   :  { %v244_v59 = vmax.f32 %v207_v57, 0.0  ;;  %v209_v60 = vpop.f32.mrb[3].mxu0  ;;  %v981_v57 = vunpack.i.l.bf16 %v980_v38  ;;  %vm529_vm4 = vcmp.eq.s32.totalorder %v1333_v56, 1 }
 0x140   :  { %v245_v62 = vmax.f32 %v209_v60, 0.0  ;;  %v982_v60 = vunpack.i.h.bf16 %v980_v38 }
 0x141   :  { %v258_v63 = vpack.c.bf16 %v244_v59, %v242_v58 }
 0x142   :  { %v259_v1 = vpack.c.bf16 %v245_v62, %v243_v61 }
 0x144   :  { %v213_v2 = vpop.f32.mrb[4].mxu0  ;;  %433 = vmatprep.mubr.bf16.mxu0 %v259_v1  ;;  %v1337_v1 = vpop.permute.xlu1 %993 }
 0x145   :  { %v215_v0 = vpop.f32.mrb[5].mxu0  ;;  %434 = vmatmul.mubr.bf16.vlgmr.msra.gmra.mrb[16].mxu0 %v258_v63  ;;  %v246_v4 = vmax.f32 %v213_v2, 0.0  ;;  %v988_v2 = vunpack.i.h.bf16 %v1320_v35 }
 0x146   :  { %v217_v3 = vpop.f32.mrb[6].mxu0  ;;  %v247_v7 = vmax.f32 %v215_v0, 0.0  ;;  %945 = vmatpush3.bf16.msra.mxu0 %v942_v33 }
 0x147   :  { %v248_v5 = vmax.f32 %v217_v3, 0.0  ;;  %v219_v6 = vpop.f32.mrb[7].mxu0  ;;  %937 = vmatprep.subr.msk.mxu0 %vm159_vm0, %v745_v34 }
 0x148   :  { %v249_v8 = vmax.f32 %v219_v6, 0.0 }
 0x149   :  { %v260_v9 = vpack.c.bf16 %v248_v5, %v246_v4  ;;  %v987_v5 = vunpack.i.l.bf16 %v1320_v35 }
 0x14a   :  { %v261_v10 = vpack.c.bf16 %v249_v8, %v247_v7  ;;  %938 = vmatpush3.msk.msra.mxu0 %vm159_vm0, %v745_v34  ;;  %vm714_vm0 = vcmask 1041409  }
 0x14c   :  { %v223_v11 = vpop.f32.mrb[8].mxu0  ;;  %441 = vmatprep.mubr.bf16.mxu1 %v261_v10 }
 0x14d   :  { %v225_v12 = vpop.f32.mrb[9].mxu0  ;;  %442 = vmatmul.mubr.bf16.vlgmr.msra.gmra.mrb[0].mxu1 %v260_v9  ;;  %v250_v14 = vmax.f32 %v223_v11, 0.0 }
 0x14e   :  { %v227_v13 = vpop.f32.mrb[10].mxu0  ;;  %v251_v17 = vmax.f32 %v225_v12, 0.0 }
 0x14f   :  { %v252_v15 = vmax.f32 %v227_v13, 0.0  ;;  %v229_v16 = vpop.f32.mrb[11].mxu0 }
 0x150   :  { %v253_v18 = vmax.f32 %v229_v16, 0.0 }
 0x151   :  { %v262_v19 = vpack.c.bf16 %v252_v15, %v250_v14 }
 0x152   :  { %v263_v20 = vpack.c.bf16 %v253_v18, %v251_v17 }
 0x154   :  { %v233_v21 = vpop.f32.mrb[12].mxu0  ;;  %449 = vmatprep.mubr.bf16.mxu1 %v263_v20 }
 0x155   :  { %v235_v22 = vpop.f32.mrb[13].mxu0  ;;  %450 = vmatmul.mubr.bf16.gmra.mrb[4].mxu1 %v262_v19  ;;  %v254_v24 = vmax.f32 %v233_v21, 0.0 }
 0x156   :  { %v237_v23 = vpop.f32.mrb[14].mxu0  ;;  %v255_v27 = vmax.f32 %v235_v22, 0.0 }
 0x157   :  { %v256_v25 = vmax.f32 %v237_v23, 0.0  ;;  %v239_v26 = vpop.f32.mrb[15].mxu0 }
 0x158   :  { %v257_v28 = vmax.f32 %v239_v26, 0.0 }
 0x159   :  { %v264_v29 = vpack.c.bf16 %v256_v25, %v254_v24  ;;  %v1349_v24 = vpop.permute.xlu1 %998 }
 0x15a   :  { %v265_v30 = vpack.c.bf16 %v257_v28, %v255_v27  ;;  %v996_v27 = vunpack.i.h.bf16 %v1337_v1  ;;  %v995_v28 = vunpack.i.l.bf16 %v1337_v1  ;;  %v1001_v38 = vunpack.i.h.bf16 %v1349_v24 }
 0x15b   :  { %v1000_v39 = vunpack.i.l.bf16 %v1349_v24 }
 0x15c   :  { %457 = vmatprep.mubr.bf16.mxu1 %v265_v30 }
 0x15d   :  { %458 = vmatmul.mubr.bf16.gmra.mrb[8].mxu1 %v264_v29 }
 0x218   :  { %v904_v45 = vpop.f32.mrb[16].mxu0 }
 0x219   :  { %v905_v48 = vpop.f32.mrb[17].mxu0 }
 0x21a   :  { %v906_v49 = vadd.f32 %v905_v48, %v904_v45  ;;  %v907_v50 = vpop.f32.mrb[18].mxu0 }
 0x21b   :  { %v908_v51 = vpop.f32.mrb[19].mxu0 }
 0x21c   :  { %v436_v52 = vadd.f32 %v906_v49, %v1328_v46  ;;  %v909_v53 = vadd.f32 %v908_v51, %v907_v50 }
 0x21e   :  { %v466_v58 = vmax.f32 %v436_v52, 0.0  ;;  %v439_v59 = vadd.f32 %v909_v53, %v1328_v46 }
 0x220   :  { %v467_v61 = vmax.f32 %v439_v59, 0.0  ;;  %v537_v62 = vsel %vm523_vm11, %v466_v58, %v1331_v54  ;;  %v910_v63 = vpop.f32.mrb[0].mxu1  ;;  %vm832_vm11 = vcmask 23552  }
 0x221   :  { %v585_v0 = vmul.f32 %v981_v57, %v537_v62  ;;  %v594_v3 = vsel %vm593_vm12, %v537_v62, 0.0  ;;  %v911_v4 = vpop.f32.mrb[1].mxu1  ;;  %v516_v62 = vpop.permute.xlu0 %515 }
 0x222   :  { %v595_v6 = vrot.slane %v594_v3, 4  ;;  %v538_v7 = vsel %vm524_vm13, %v467_v61, %v1331_v54  ;;  %v912_v8 = vadd.f32 %v911_v4, %v910_v63  ;;  %v913_v9 = vpop.f32.mrb[2].mxu1  ;;  %vm528_vm2 = vcmp.eq.s32.totalorder %v516_v62, 1 }
 0x223   :  { %v650_v10 = vsel %vm593_vm12, %v585_v0, 0.0  ;;  %v586_v11 = vmul.f32 %v982_v60, %v538_v7  ;;  %v601_v12 = vsel %vm593_vm12, %v538_v7, 0.0  ;;  %v914_v13 = vpop.f32.mrb[3].mxu1  ;;  %vm834_vm13 = vcmask 48128  }
 0x224   :  { %v596_v14 = vadd.f32 %v595_v6, %v594_v3  ;;  %v651_v15 = vrot.slane %v650_v10, 4  ;;  %v602_v16 = vrot.slane %v601_v12, 4  ;;  %v444_v17 = vadd.f32 %v912_v8, %v1328_v46 }
 0x225   :  { %v657_v18 = vsel %vm593_vm12, %v586_v11, 0.0  ;;  %v915_v19 = vadd.f32 %v914_v13, %v913_v9 }
 0x226   :  { %v597_v20 = vrot.slane %v596_v14, 2  ;;  %v652_v21 = vadd.f32 %v651_v15, %v650_v10  ;;  %v603_v22 = vadd.f32 %v602_v16, %v601_v12  ;;  %v658_v23 = vrot.slane %v657_v18, 4 }
 0x227   :  { %v468_v25 = vmax.f32 %v444_v17, 0.0  ;;  %v447_v26 = vadd.f32 %v915_v19, %v1328_v46 }
 0x228   :  { %v598_v29 = vadd.f32 %v597_v20, %v596_v14  ;;  %v653_v30 = vrot.slane %v652_v21, 2  ;;  %v604_v31 = vrot.slane %v603_v22, 2  ;;  %v659_v32 = vadd.f32 %v658_v23, %v657_v18  ;;  %v916_v33 = vpop.f32.mrb[4].mxu1 }
 0x229   :  { %v539_v34 = vsel %vm525_vm14, %v468_v25, %v1331_v54  ;;  %v469_v35 = vmax.f32 %v447_v26, 0.0  ;;  %v917_v37 = vpop.f32.mrb[5].mxu1  ;;  %vm836_vm14 = vcmask 64512  }
 0x22a   :  { %v599_v41 = vrot.slane %v598_v29, 1  ;;  %v654_v42 = vadd.f32 %v653_v30, %v652_v21  ;;  %v605_v43 = vadd.f32 %v604_v31, %v603_v22  ;;  %v660_v45 = vrot.slane %v659_v32, 2  ;;  %v919_v47 = vpop.f32.mrb[6].mxu1 }
 0x22b   :  { %v587_v48 = vmul.f32 %v987_v5, %v539_v34  ;;  %v608_v49 = vsel %vm593_vm12, %v539_v34, 0.0  ;;  %v540_v36 = vsel %vm526_vm15, %v469_v35, %v1331_v54  ;;  %v918_v50 = vadd.f32 %v917_v37, %v916_v33  ;;  %v920_v51 = vpop.f32.mrb[7].mxu1 }
 0x22c   :  { %v600_v52 = vadd.f32 %v599_v41, %v598_v29  ;;  %v655_v53 = vrot.slane %v654_v42, 1  ;;  %v606_v55 = vrot.slane %v605_v43, 1  ;;  %v661_v57 = vadd.f32 %v660_v45, %v659_v32  ;;  %v522_v32 = vpop.permute.xlu0 %521 }
 0x22d   :  { %v609_v58 = vrot.slane %v608_v49, 4  ;;  %v664_v59 = vsel %vm593_vm12, %v587_v48, 0.0  ;;  %v588_v60 = vmul.f32 %v988_v2, %v540_v36  ;;  %v615_v61 = vsel %vm593_vm12, %v540_v36, 0.0 }
 0x22e   :  { %v656_v63 = vadd.f32 %v655_v53, %v654_v42  ;;  %v607_v0 = vadd.f32 %v606_v55, %v605_v43  ;;  %v662_v3 = vrot.slane %v661_v57, 1  ;;  %v665_v4 = vrot.slane %v664_v59, 4 }
 0x22f   :  { %v610_v40 = vadd.f32 %v609_v58, %v608_v49  ;;  %v616_v5 = vrot.slane %v615_v61, 4  ;;  %v671_v6 = vsel %vm593_vm12, %v588_v60, 0.0  ;;  %v452_v7 = vadd.f32 %v918_v50, %v1328_v46 }
 0x230   :  { %v663_v8 = vadd.f32 %v662_v3, %v661_v57  ;;  %v715_v9 = vsel %vm714_vm0, %v607_v0, %v600_v52  ;;  %v666_v10 = vadd.f32 %v665_v4, %v664_v59  ;;  %v672_v11 = vrot.slane %v671_v6, 4  ;;  %v922_v2 = vpop.f32.mrb[8].mxu1 }
 0x231   :  { %v611_v12 = vrot.slane %v610_v40, 2  ;;  %v617_v13 = vadd.f32 %v616_v5, %v615_v61  ;;  %v470_v14 = vmax.f32 %v452_v7, 0.0  ;;  %v921_v15 = vadd.f32 %v920_v51, %v919_v47  ;;  %v923_v16 = vpop.f32.mrb[9].mxu1 }
 0x232   :  { %v736_v17 = vsel %vm714_vm0, %v663_v8, %v656_v63  ;;  %v667_v18 = vrot.slane %v666_v10, 2  ;;  %v673_v19 = vadd.f32 %v672_v11, %v671_v6  ;;  %v924_v20 = vadd.f32 %v923_v16, %v922_v2  ;;  %v925_v21 = vpop.f32.mrb[10].mxu1 }
 0x233   :  { %v612_v22 = vadd.f32 %v611_v12, %v610_v40  ;;  %v618_v23 = vrot.slane %v617_v13, 2  ;;  %v455_v25 = vadd.f32 %v921_v15, %v1328_v46  ;;  %v541_v26 = vsel %vm527_vm1, %v470_v14, %v1331_v54  ;;  %v926_v29 = vpop.f32.mrb[11].mxu1 }
 0x234   :  { %v668_v30 = vadd.f32 %v667_v18, %v666_v10  ;;  %v674_v31 = vrot.slane %v673_v19, 2  ;;  %v589_v33 = vmul.f32 %v995_v28, %v541_v26  ;;  %v622_v34 = vsel %vm593_vm12, %v541_v26, 0.0 }
 0x235   :  { %v613_v35 = vrot.slane %v612_v22, 1  ;;  %v619_v37 = vadd.f32 %v618_v23, %v617_v13  ;;  %v471_v41 = vmax.f32 %v455_v25, 0.0  ;;  %v623_v42 = vrot.slane %v622_v34, 4 }
 0x236   :  { %v669_v43 = vrot.slane %v668_v30, 1  ;;  %v675_v45 = vadd.f32 %v674_v31, %v673_v19  ;;  %v678_v47 = vsel %vm593_vm12, %v589_v33, 0.0  ;;  %v460_v44 = vadd.f32 %v924_v20, %v1328_v46 }
 0x237   :  { %v614_v48 = vadd.f32 %v613_v35, %v612_v22  ;;  %v620_v49 = vrot.slane %v619_v37, 1  ;;  %vm530_vm6 = vcmp.eq.s32.totalorder %v522_v32, 1  ;;  %v542_v36 = vsel %vm528_vm2, %v471_v41, %v1331_v54 }
 0x238   :  { %v624_v50 = vadd.f32 %v623_v42, %v622_v34  ;;  %v670_v28 = vadd.f32 %v669_v43, %v668_v30  ;;  %v676_v51 = vrot.slane %v675_v45, 1  ;;  %v590_v52 = vmul.f32 %v996_v27, %v542_v36 }
 0x239   :  { %v629_v53 = vsel %vm593_vm12, %v542_v36, 0.0  ;;  %v621_v55 = vadd.f32 %v620_v49, %v619_v37  ;;  %v679_v59 = vrot.slane %v678_v47, 4  ;;  %v472_v63 = vmax.f32 %v460_v44, 0.0 }
 0x23a   :  { %v625_v57 = vrot.slane %v624_v50, 2  ;;  %v630_v58 = vrot.slane %v629_v53, 4  ;;  %v677_v60 = vadd.f32 %v676_v51, %v675_v45  ;;  %v685_v61 = vsel %vm593_vm12, %v590_v52, 0.0 }
 0x23b   :  { %v927_v0 = vadd.f32 %v926_v29, %v925_v21  ;;  %v680_v4 = vadd.f32 %v679_v59, %v678_v47  ;;  %v686_v40 = vrot.slane %v685_v61, 4  ;;  %v543_v1 = vsel %vm529_vm4, %v472_v63, %v1331_v54 }
 0x23c   :  { %v626_v62 = vadd.f32 %v625_v57, %v624_v50  ;;  %v631_v3 = vadd.f32 %v630_v58, %v629_v53  ;;  %v717_v5 = vsel %vm716_vm3, %v614_v48, %v715_v9  ;;  %v737_v6 = vsel %vm716_vm3, %v670_v28, %v736_v17 }
 0x23d   :  { %v463_v27 = vadd.f32 %v927_v0, %v1328_v46  ;;  %v681_v10 = vrot.slane %v680_v4, 2  ;;  %v687_v11 = vadd.f32 %v686_v40, %v685_v61  ;;  %v591_v2 = vmul.f32 %v1000_v39, %v543_v1 }
 0x23e   :  { %v627_v7 = vrot.slane %v626_v62, 1  ;;  %v632_v8 = vrot.slane %v631_v3, 2  ;;  %v636_v12 = vsel %vm593_vm12, %v543_v1, 0.0  ;;  %v719_v14 = vsel %vm718_vm5, %v621_v55, %v717_v5 }
 0x23f   :  { %v473_v13 = vmax.f32 %v463_v27, 0.0  ;;  %v682_v16 = vadd.f32 %v681_v10, %v680_v4  ;;  %v688_v46 = vrot.slane %v687_v11, 2  ;;  %v637_v18 = vrot.slane %v636_v12, 4 }
 0x240   :  { %v628_v56 = vadd.f32 %v627_v7, %v626_v62  ;;  %v633_v15 = vadd.f32 %v632_v8, %v631_v3  ;;  %v692_v9 = vsel %vm593_vm12, %v591_v2, 0.0  ;;  %v738_v19 = vsel %vm718_vm5, %v677_v60, %v737_v6 }
 0x241   :  { %v544_v17 = vsel %vm530_vm6, %v473_v13, %v1331_v54  ;;  %v683_v21 = vrot.slane %v682_v16, 1  ;;  %v689_v39 = vadd.f32 %v688_v46, %v687_v11  ;;  %v693_v22 = vrot.slane %v692_v9, 4 }
 0x242   :  { %v634_v20 = vrot.slane %v633_v15, 1  ;;  %v638_v23 = vadd.f32 %v637_v18, %v636_v12  ;;  %v592_v25 = vmul.f32 %v1001_v38, %v544_v17  ;;  %v643_v26 = vsel %vm593_vm12, %v544_v17, 0.0 }
 0x243   :  { %v721_v29 = vsel %vm720_vm7, %v628_v56, %v719_v14  ;;  %v684_v31 = vadd.f32 %v683_v21, %v682_v16  ;;  %v690_v33 = vrot.slane %v689_v39, 1  ;;  %v694_v34 = vadd.f32 %v693_v22, %v692_v9 }
 0x244   :  { %v635_v30 = vadd.f32 %v634_v20, %v633_v15  ;;  %v639_v32 = vrot.slane %v638_v23, 2  ;;  %v644_v54 = vrot.slane %v643_v26, 4  ;;  %v699_v35 = vsel %vm593_vm12, %v592_v25, 0.0 }
 0x245   :  { %v691_v37 = vadd.f32 %v690_v33, %v689_v39  ;;  %v695_v41 = vrot.slane %v694_v34, 2  ;;  %v700_v42 = vrot.slane %v699_v35, 4  ;;  %v739_v38 = vsel %vm720_vm7, %v684_v31, %v738_v19 }
 0x246   :  { %v723_v43 = vsel %vm722_vm8, %v635_v30, %v721_v29  ;;  %v640_v45 = vadd.f32 %v639_v32, %v638_v23  ;;  %v645_v24 = vadd.f32 %v644_v54, %v643_v26 }
 0x247   :  { %v696_v47 = vadd.f32 %v695_v41, %v694_v34  ;;  %v701_v44 = vadd.f32 %v700_v42, %v699_v35  ;;  %v740_v48 = vsel %vm722_vm8, %v691_v37, %v739_v38 }
 0x248   :  { %v641_v49 = vrot.slane %v640_v45, 1  ;;  %v646_v36 = vrot.slane %v645_v24, 2 }
 0x249   :  { %v697_v50 = vrot.slane %v696_v47, 1  ;;  %v702_v28 = vrot.slane %v701_v44, 2 }
 0x24a   :  { %v642_v51 = vadd.f32 %v641_v49, %v640_v45  ;;  %v647_v52 = vadd.f32 %v646_v36, %v645_v24 }
 0x24b   :  { %v698_v53 = vadd.f32 %v697_v50, %v696_v47  ;;  %v703_v55 = vadd.f32 %v702_v28, %v701_v44 }
 0x24c   :  { %v648_v57 = vrot.slane %v647_v52, 1  ;;  %v725_v58 = vsel %vm724_vm9, %v642_v51, %v723_v43 }
 0x24d   :  { %v704_v59 = vrot.slane %v703_v55, 1  ;;  %v741_v60 = vsel %vm724_vm9, %v698_v53, %v740_v48 }
 0x24e   :  { %v649_v61 = vadd.f32 %v648_v57, %v647_v52 }
 0x24f   :  { %v705_v63 = vadd.f32 %v704_v59, %v703_v55 }
 0x250   :  { %v727_v0 = vsel %vm726_vm10, %v649_v61, %v725_v58 }
 0x251   :  { %939 = vmatprep.mubr.msk.f32.mxu0 %vm593_vm12, %v727_v0  ;;  %v742_v62 = vsel %vm726_vm10, %v705_v63, %v741_v60 }
 0x252   :  { %940 = vmatmul.mubr.msk.f32.vlgmr.msra.gmra.mrb[20].mxu0 %vm593_vm12, %v742_v62 }
 0x325   :  { %v941_v3 = vpop.f32.mrb[20].mxu0 }
 0x326   :  { %829 = vrot.lane.b32.xlu0 %v941_v3, %s1188_s4  ;;  %v819_v4 = vpop.f32.mrb[21].mxu0 }
 0x398   :  { %v830_v40 = vpop.permute.xlu0 %829 }
 0x399   :  { %v833_v1 = vsel %vm832_vm11, %v819_v4, %v830_v40 }
 0x39a   :  { %v835_v27 = vsel %vm834_vm13, %v833_v1, 0.0 }
 0x39b   :  { %837 = vst.msk [vmem:[#allocation11] sm:$0xff] %vm836_vm14, %v835_v27 }
 0x39c   :  { %1156 = shalt.err (!%p1153_p2)
}
 0x39d   :  { %s1157_s9 = scalar_lea.hbm %s1427_s5, 128 }
 0x39e   :  { %p1158_p3 = scmp.ne.s32.totalorder %s1427_s5, %s1157_s9  ;;  %p1161_p4 = scmp.lt.u32.totalorder %s1157_s9, %s1427_s5 }
 0x3a0   :  { %p1163_p5 = pnand %p1161_p4, %p1158_p3 }
 0x3a2   :  { %1166 = shalt.err (!%p1163_p5)
}
 0x3a3   :  { %847 = dma.vmem_to_hbm [thread:$0]  %s845_s29, 128, %s1427_s5, [#allocation4]  }
 0x3a4   :  { %1173 = dma.done.wait [#allocation4], 128  }
 0x3a5   :  { %1174 = vsyncadd [#allocation4], 4294967168 }
 0x3a6   :  { %851 = vsyncpa [#allocation3], 1 }
 0x3a7   :  { %852 = vsyncpa [#allocation6], 1 }
 0x3a8   :  { %853 = vsyncpa [#allocation9], 1 }
 0x3a9   :  { %854 = vsyncpa [#allocation4], 1 }

</bundles_post_ra>
